<compile_context>
chip_gen: v5e
topology: v5e:2x2
jax: 0.10.0
libtpu: 0.0.40
codegen_flags: <defaults>
</compile_context>

<pallas_src>
import functools

import jax
import jax.numpy as jnp
from jax.experimental import pallas as pl
from jax.experimental.pallas import tpu as pltpu

LANE = 128      # vreg lane width
SUBLANE = 8     # vreg sublane height (f32)
TB_MAX = 1024   # max batch tile (rows per grid step)


def _round_up(x: int, m: int) -> int:
    return ((x + m - 1) // m) * m


def make_mlp_policy_kernel(n_layers: int):
    """Pallas kernel for one batch tile of the MLPPolicy forward pass.

    Kernel ref order:
        obs, W1, b1, ..., W_{n_layers+1}, b_{n_layers+1}, logstd, eps, out
    """
    n_linear = n_layers + 1

    def kernel(*refs):
        obs_ref = refs[0]
        w_refs = [refs[1 + 2 * i] for i in range(n_linear)]
        b_refs = [refs[2 + 2 * i] for i in range(n_linear)]
        logstd_ref = refs[1 + 2 * n_linear]
        eps_ref = refs[2 + 2 * n_linear]
        out_ref = refs[3 + 2 * n_linear]

        x = obs_ref[...]
        # Hidden layers: Linear -> tanh (ptu.build_mlp default activation).
        for i in range(n_layers):
            x = jnp.tanh(
                jnp.dot(x, w_refs[i][...], preferred_element_type=jnp.float32)
                + b_refs[i][...]
            )
        # Output layer: Linear -> identity  ==> mean of the Normal.
        mean = (
            jnp.dot(x, w_refs[n_layers][...], preferred_element_type=jnp.float32)
            + b_refs[n_layers][...]
        )
        # rsample(): mean + scale * eps.  The reference uses `self.logstd`
        # directly as the scale (not exp(logstd)); reproduced literally.
        out_ref[...] = mean + logstd_ref[...] * eps_ref[...]

    return kernel


@functools.partial(jax.jit, static_argnames=("n_layers",))
def mlp_policy_forward(obs, ws, bs, logstd, eps, *, n_layers):
    """obs: [B, ob_dim]; ws[i]: [in_i, out_i]; bs[i]: [1, out_i];
    logstd: [1, ac_dim]; eps: [B, ac_dim]  ->  action: [B, ac_dim] (f32)."""
    obs = obs.astype(jnp.float32)
    eps = eps.astype(jnp.float32)
    logstd = logstd.astype(jnp.float32)

    B, ob_dim = obs.shape
    ac_dim = ws[-1].shape[1]
    dims = [ob_dim] + [w.shape[1] for w in ws]            # [ob, size, ..., ac]
    dims_p = [_round_up(d, LANE) for d in dims]            # lane-dense feature dims
    ob_pad, ac_pad = dims_p[0], dims_p[-1]
    size_pad = max(dims_p[1:-1]) if n_layers > 0 else ob_pad

    # Batch tile: multiple of the sublane height, capped at TB_MAX; batch is
    # zero-padded to a multiple of TB so there are no remainder blocks.
    TB = min(TB_MAX, _round_up(B, SUBLANE))
    B_pad = _round_up(B, TB)

    # Zero-pad everything to the lane-dense / tile-aligned shapes. Zero padding
    # is exact: padded input columns hit zero weight rows, padded hidden lanes
    # carry tanh(0)=0 into zero weight rows, and padded output lanes are
    # sliced off at the end.
    obs_p = jnp.pad(obs, ((0, B_pad - B), (0, ob_pad - ob_dim)))
    eps_p = jnp.pad(eps, ((0, B_pad - B), (0, ac_pad - ac_dim)))
    logstd_p = jnp.pad(logstd, ((0, 0), (0, ac_pad - ac_dim)))
    ws_p, bs_p = [], []
    for i, (w, b) in enumerate(zip(ws, bs)):
        din, dout = w.shape
        ws_p.append(jnp.pad(w.astype(jnp.float32),
                            ((0, dims_p[i] - din), (0, dims_p[i + 1] - dout))))
        bs_p.append(jnp.pad(b.astype(jnp.float32),
                            ((0, 0), (0, dims_p[i + 1] - dout))))

    # Interleave weights and biases to match the kernel's ref order.
    params = []
    param_specs = []
    for w, b in zip(ws_p, bs_p):
        params.extend([w, b])
        param_specs.append(pl.BlockSpec(w.shape, lambda i: (0, 0)))  # resident
        param_specs.append(pl.BlockSpec(b.shape, lambda i: (0, 0)))  # resident

    grid = (B_pad // TB,)
    in_specs = (
        [pl.BlockSpec((TB, ob_pad), lambda i: (i, 0))]        # obs: batch-tiled
        + param_specs                                         # weights/biases
        + [pl.BlockSpec((1, ac_pad), lambda i: (0, 0)),       # logstd: resident
           pl.BlockSpec((TB, ac_pad), lambda i: (i, 0))]      # eps: batch-tiled
    )
    out_specs = pl.BlockSpec((TB, ac_pad), lambda i: (i, 0))  # lane-dense output

    # VMEM budget: double-buffered batch tiles + resident params + activation
    # scratch, with headroom; capped well under v7x's 64 MiB physical VMEM.
    tile_bytes = 4 * TB * (ob_pad + 2 * ac_pad + 2 * size_pad)
    param_bytes = 4 * (sum(w.size for w in ws_p) + sum(b.size for b in bs_p) + ac_pad)
    vmem_limit = int(min(2 * (2 * tile_bytes + param_bytes) + (4 << 20), 48 << 20))

    # Advisory cost estimate for XLA's scheduler (padded shapes = actual work).
    flops = 2 * B_pad * sum(dims_p[i] * dims_p[i + 1] for i in range(len(dims_p) - 1))
    transcendentals = B_pad * size_pad * n_layers
    bytes_accessed = 4 * (B_pad * (ob_pad + 2 * ac_pad) + param_bytes // 4)

    kernel = make_mlp_policy_kernel(n_layers)
    out_p = pl.pallas_call(
        kernel,
        out_shape=jax.ShapeDtypeStruct((B_pad, ac_pad), jnp.float32),
        grid=grid,
        in_specs=in_specs,
        out_specs=out_specs,
        compiler_params=pltpu.CompilerParams(
            dimension_semantics=("parallel",),
            vmem_limit_bytes=vmem_limit,
        ),
        cost_estimate=pl.CostEstimate(
            flops=flops,
            transcendentals=transcendentals,
            bytes_accessed=bytes_accessed,
        ),
    )(obs_p, *params, logstd_p, eps_p)

    # Drop batch / lane padding.
    return out_p[:B, :ac_dim]


def init_params(key, ob_dim, ac_dim, n_layers, size):
    """Deterministic init mirroring torch.nn.Linear defaults (U(-1/sqrt(fan_in), ...))."""
    dims = [ob_dim] + [size] * n_layers + [ac_dim]
    ws, bs = [], []
    for i in range(len(dims) - 1):
        fan_in, fan_out = dims[i], dims[i + 1]
        key, kw, kb = jax.random.split(key, 3)
        bound = 1.0 / (fan_in ** 0.5)
        # Stored directly as [in, out] (== transpose of PyTorch's [out, in]).
        w = jax.random.uniform(kw, (fan_in, fan_out), jnp.float32, -bound, bound)
        b = jax.random.uniform(kb, (1, fan_out), jnp.float32, -bound, bound)
        ws.append(w)
        bs.append(b)
    # logstd initialized to zeros in the module (nn.Parameter(torch.zeros(ac_dim))).
    logstd = jnp.zeros((1, ac_dim), jnp.float32)
    return ws, bs, logstd


def _reference(obs, ws, bs, logstd, eps, n_layers):
    x = obs
    for i in range(n_layers):
        x = jnp.tanh(x @ ws[i] + bs[i])
    mean = x @ ws[-1] + bs[-1]
    return mean + logstd * eps


if __name__ == "__main__":
    # Small shapes consistent with the module's forward: obs [B, ob_dim].
    B, ob_dim, ac_dim, n_layers, size = 8, 16, 8, 2, 32

    key = jax.random.PRNGKey(0)
    k_obs, k_params, k_eps, k_obs2, k_eps2 = jax.random.split(key, 5)

    obs = jax.random.normal(k_obs, (B, ob_dim), jnp.float32)
    ws, bs, logstd = init_params(k_params, ob_dim, ac_dim, n_layers, size)
    # Reparameterized noise for rsample(); drawn outside the kernel so the
    # pure-JAX reference check is bit-reproducible.
    # TODO(synk): optionally generate eps in-kernel with pltpu.prng_random_bits
    # to drop one HBM input stream in the mem-bound large-batch regime.
    eps = jax.random.normal(k_eps, (B, ac_dim), jnp.float32)

    action = mlp_policy_forward(obs, ws, bs, logstd, eps, n_layers=n_layers)
    jax.block_until_ready(action)
    ref = _reference(obs, ws, bs, logstd, eps, n_layers)
    assert action.shape == (B, ac_dim)
    assert jnp.allclose(action, ref, atol=1e-5, rtol=1e-5)

    # Second check with a larger, non-aligned batch to exercise batch tiling,
    # padding and multi-step grid pipelining.
    B2 = 600
    obs2 = jax.random.normal(k_obs2, (B2, ob_dim), jnp.float32)
    eps2 = jax.random.normal(k_eps2, (B2, ac_dim), jnp.float32)
    action2 = mlp_policy_forward(obs2, ws, bs, logstd, eps2, n_layers=n_layers)
    jax.block_until_ready(action2)
    ref2 = _reference(obs2, ws, bs, logstd, eps2, n_layers)
    assert action2.shape == (B2, ac_dim)
    assert jnp.allclose(action2, ref2, atol=1e-5, rtol=1e-5)

    print("KERNEL_OK")
</pallas_src>

<mosaic_0001>
module attributes {stable_mosaic.version = 11 : i64} {
  func.func @kernel(%arg0: i32, %arg1: memref<8x128xf32, #tpu.memory_space<vmem>>, %arg2: memref<128x128xf32, #tpu.memory_space<vmem>>, %arg3: memref<1x128xf32, #tpu.memory_space<vmem>>, %arg4: memref<128x128xf32, #tpu.memory_space<vmem>>, %arg5: memref<1x128xf32, #tpu.memory_space<vmem>>, %arg6: memref<128x128xf32, #tpu.memory_space<vmem>>, %arg7: memref<1x128xf32, #tpu.memory_space<vmem>>, %arg8: memref<1x128xf32, #tpu.memory_space<vmem>>, %arg9: memref<8x128xf32, #tpu.memory_space<vmem>>, %arg10: memref<8x128xf32, #tpu.memory_space<vmem>>) attributes {dimension_semantics = [#tpu.dimension_semantics<parallel>], iteration_bounds = array<i64: 1>, scalar_prefetch = 0 : i64, scratch_operands = 0 : i64, tpu.core_type = #tpu.core_type<tc>, window_params = [{transform_indices = @transform_0, window_bounds = array<i64: 8, 128>}, {pipeline_mode = #tpu.pipeline_mode<synchronous>, transform_indices = @transform_1, window_bounds = array<i64: 128, 128>}, {pipeline_mode = #tpu.pipeline_mode<synchronous>, transform_indices = @transform_2, window_bounds = array<i64: 1, 128>}, {pipeline_mode = #tpu.pipeline_mode<synchronous>, transform_indices = @transform_3, window_bounds = array<i64: 128, 128>}, {pipeline_mode = #tpu.pipeline_mode<synchronous>, transform_indices = @transform_4, window_bounds = array<i64: 1, 128>}, {pipeline_mode = #tpu.pipeline_mode<synchronous>, transform_indices = @transform_5, window_bounds = array<i64: 128, 128>}, {pipeline_mode = #tpu.pipeline_mode<synchronous>, transform_indices = @transform_6, window_bounds = array<i64: 1, 128>}, {pipeline_mode = #tpu.pipeline_mode<synchronous>, transform_indices = @transform_7, window_bounds = array<i64: 1, 128>}, {transform_indices = @transform_8, window_bounds = array<i64: 8, 128>}, {transform_indices = @transform_9, window_bounds = array<i64: 8, 128>}]} {
    %c0 = arith.constant 0 : index
    %c0_0 = arith.constant 0 : index
    %0 = vector.load %arg1[%c0, %c0_0] : memref<8x128xf32, #tpu.memory_space<vmem>>, vector<8x128xf32>
    %c0_1 = arith.constant 0 : index
    %c0_2 = arith.constant 0 : index
    %1 = vector.load %arg2[%c0_1, %c0_2] : memref<128x128xf32, #tpu.memory_space<vmem>>, vector<128x128xf32>
    %cst = arith.constant dense<0.000000e+00> : vector<8x128xf32>
    %2 = tpu.matmul %0, %1, %cst {dimension_numbers = #tpu.dot_dimension_numbers<[1], [0], [0], [1], [0, 0, 1, 1], [], []>} : vector<8x128xf32>, vector<128x128xf32>, vector<8x128xf32> -> vector<8x128xf32>
    %c0_3 = arith.constant 0 : index
    %c0_4 = arith.constant 0 : index
    %3 = vector.load %arg3[%c0_3, %c0_4] : memref<1x128xf32, #tpu.memory_space<vmem>>, vector<1x128xf32>
    %4 = vector.broadcast %3 : vector<1x128xf32> to vector<8x128xf32>
    %5 = arith.addf %2, %4 : vector<8x128xf32>
    %6 = math.tanh %5 : vector<8x128xf32>
    %c0_5 = arith.constant 0 : index
    %c0_6 = arith.constant 0 : index
    %7 = vector.load %arg4[%c0_5, %c0_6] : memref<128x128xf32, #tpu.memory_space<vmem>>, vector<128x128xf32>
    %cst_7 = arith.constant dense<0.000000e+00> : vector<8x128xf32>
    %8 = tpu.matmul %6, %7, %cst_7 {dimension_numbers = #tpu.dot_dimension_numbers<[1], [0], [0], [1], [0, 0, 1, 1], [], []>} : vector<8x128xf32>, vector<128x128xf32>, vector<8x128xf32> -> vector<8x128xf32>
    %c0_8 = arith.constant 0 : index
    %c0_9 = arith.constant 0 : index
    %9 = vector.load %arg5[%c0_8, %c0_9] : memref<1x128xf32, #tpu.memory_space<vmem>>, vector<1x128xf32>
    %10 = vector.broadcast %9 : vector<1x128xf32> to vector<8x128xf32>
    %11 = arith.addf %8, %10 : vector<8x128xf32>
    %12 = math.tanh %11 : vector<8x128xf32>
    %c0_10 = arith.constant 0 : index
    %c0_11 = arith.constant 0 : index
    %13 = vector.load %arg6[%c0_10, %c0_11] : memref<128x128xf32, #tpu.memory_space<vmem>>, vector<128x128xf32>
    %cst_12 = arith.constant dense<0.000000e+00> : vector<8x128xf32>
    %14 = tpu.matmul %12, %13, %cst_12 {dimension_numbers = #tpu.dot_dimension_numbers<[1], [0], [0], [1], [0, 0, 1, 1], [], []>} : vector<8x128xf32>, vector<128x128xf32>, vector<8x128xf32> -> vector<8x128xf32>
    %c0_13 = arith.constant 0 : index
    %c0_14 = arith.constant 0 : index
    %15 = vector.load %arg7[%c0_13, %c0_14] : memref<1x128xf32, #tpu.memory_space<vmem>>, vector<1x128xf32>
    %16 = vector.broadcast %15 : vector<1x128xf32> to vector<8x128xf32>
    %17 = arith.addf %14, %16 : vector<8x128xf32>
    %c0_15 = arith.constant 0 : index
    %c0_16 = arith.constant 0 : index
    %18 = vector.load %arg8[%c0_15, %c0_16] : memref<1x128xf32, #tpu.memory_space<vmem>>, vector<1x128xf32>
    %c0_17 = arith.constant 0 : index
    %c0_18 = arith.constant 0 : index
    %19 = vector.load %arg9[%c0_17, %c0_18] : memref<8x128xf32, #tpu.memory_space<vmem>>, vector<8x128xf32>
    %20 = vector.broadcast %18 : vector<1x128xf32> to vector<8x128xf32>
    %21 = arith.mulf %20, %19 : vector<8x128xf32>
    %22 = arith.addf %17, %21 : vector<8x128xf32>
    %c0_19 = arith.constant 0 : index
    %c0_20 = arith.constant 0 : index
    %23 = vector.load %arg10[%c0_19, %c0_20] : memref<8x128xf32, #tpu.memory_space<vmem>>, vector<8x128xf32>
    tpu.vector_store %arg10[%c0_19, %c0_20], %22 {strides = array<i32>} : memref<8x128xf32, #tpu.memory_space<vmem>>, vector<8x128xf32>,
    return
  }
  func.func @transform_0(%arg0: i32) -> (i32, i32) {
    %c0_i32 = arith.constant 0 : i32
    %c0_i32_0 = arith.constant 0 : i32
    return %arg0, %c0_i32 : i32, i32
  }
  func.func @transform_1(%arg0: i32) -> (i32, i32) {
    %c0_i32 = arith.constant 0 : i32
    %c0_i32_0 = arith.constant 0 : i32
    %c0_i32_1 = arith.constant 0 : i32
    return %c0_i32, %c0_i32_0 : i32, i32
  }
  func.func @transform_2(%arg0: i32) -> (i32, i32) {
    %c0_i32 = arith.constant 0 : i32
    %c0_i32_0 = arith.constant 0 : i32
    %c0_i32_1 = arith.constant 0 : i32
    return %c0_i32, %c0_i32_0 : i32, i32
  }
  func.func @transform_3(%arg0: i32) -> (i32, i32) {
    %c0_i32 = arith.constant 0 : i32
    %c0_i32_0 = arith.constant 0 : i32
    %c0_i32_1 = arith.constant 0 : i32
    return %c0_i32, %c0_i32_0 : i32, i32
  }
  func.func @transform_4(%arg0: i32) -> (i32, i32) {
    %c0_i32 = arith.constant 0 : i32
    %c0_i32_0 = arith.constant 0 : i32
    %c0_i32_1 = arith.constant 0 : i32
    return %c0_i32, %c0_i32_0 : i32, i32
  }
  func.func @transform_5(%arg0: i32) -> (i32, i32) {
    %c0_i32 = arith.constant 0 : i32
    %c0_i32_0 = arith.constant 0 : i32
    %c0_i32_1 = arith.constant 0 : i32
    return %c0_i32, %c0_i32_0 : i32, i32
  }
  func.func @transform_6(%arg0: i32) -> (i32, i32) {
    %c0_i32 = arith.constant 0 : i32
    %c0_i32_0 = arith.constant 0 : i32
    %c0_i32_1 = arith.constant 0 : i32
    return %c0_i32, %c0_i32_0 : i32, i32
  }
  func.func @transform_7(%arg0: i32) -> (i32, i32) {
    %c0_i32 = arith.constant 0 : i32
    %c0_i32_0 = arith.constant 0 : i32
    %c0_i32_1 = arith.constant 0 : i32
    return %c0_i32, %c0_i32_0 : i32, i32
  }
  func.func @transform_8(%arg0: i32) -> (i32, i32) {
    %c0_i32 = arith.constant 0 : i32
    %c0_i32_0 = arith.constant 0 : i32
    return %arg0, %c0_i32 : i32, i32
  }
  func.func @transform_9(%arg0: i32) -> (i32, i32) {
    %c0_i32 = arith.constant 0 : i32
    %c0_i32_0 = arith.constant 0 : i32
    return %arg0, %c0_i32 : i32, i32
  }
}

</mosaic_0001>

<bundles_post_ra>
// kernel: mlp_policy_forward.1
= control target key start
LH: loop header
LB: loop body
LE: loop exit
PB: predicated region body
PF: predicated region fallthrough
CT: control target
= control target key end

     0   :  { %s431_s0 = inlined_call_operand.vmem [shape: f32[8,128], index: 0, kind: input, shape index: {}]   ;;  %s432_s1 = inlined_call_operand.vmem [shape: f32[128,128], index: 1, kind: input, shape index: {}]   ;;  %s433_s2 = inlined_call_operand.vmem [shape: f32[1,128], index: 2, kind: input, shape index: {}]   ;;  %s434_s3 = inlined_call_operand.vmem [shape: f32[128,128], index: 3, kind: input, shape index: {}]   ;;  %s435_s4 = inlined_call_operand.vmem [shape: f32[1,128], index: 4, kind: input, shape index: {}]   ;;  %s436_s5 = inlined_call_operand.vmem [shape: f32[128,128], index: 5, kind: input, shape index: {}]   ;;  %s437_s6 = inlined_call_operand.vmem [shape: f32[1,128], index: 6, kind: input, shape index: {}]   ;;  %s438_s7 = inlined_call_operand.vmem [shape: f32[1,128], index: 7, kind: input, shape index: {}]   ;;  %s439_s8 = inlined_call_operand.vmem [shape: f32[8,128], index: 8, kind: input, shape index: {}]   ;;  %s440_s9 = inlined_call_operand.hbm [shape: f32[8,128], index: 9, kind: output, shape index: {}]  }
   0x1   :  { %v49_v0 = vld [vmem:[%s432_s1 + $0x78] sm:$0xff]  ;;  %v48_v1 = vld [vmem:[%s432_s1 + $0x70] sm:$0xff]  ;;  %v47_v2 = vld [vmem:[%s432_s1 + $0x68] sm:$0xff] }
   0x2   :  { %54 = vmatpush.msra.mxu0 %v49_v0  ;;  %v46_v3 = vld [vmem:[%s432_s1 + $0x60] sm:$0xff]  ;;  %v90_v4 = vld [vmem:[%s434_s3 + $0x78] sm:$0xff]  ;;  %v89_v6 = vld [vmem:[%s434_s3 + $0x70] sm:$0xff] }
   0x3   :  { %v45_v5 = vld [vmem:[%s432_s1 + $0x58] sm:$0xff]  ;;  %95 = vmatpush.msra.mxu1 %v90_v4  ;;  %v88_v7 = vld [vmem:[%s434_s3 + $0x68] sm:$0xff]  ;;  %v44_v8 = vld [vmem:[%s432_s1 + $0x50] sm:$0xff] }
   0x4   :  { %55 = vmatpush.msra.mxu0 %v48_v1  ;;  %v43_v9 = vld [vmem:[%s432_s1 + $0x48] sm:$0xff]  ;;  %v87_v10 = vld [vmem:[%s434_s3 + $0x60] sm:$0xff]  ;;  %v86_v11 = vld [vmem:[%s434_s3 + $0x58] sm:$0xff] }
   0x5   :  { %96 = vmatpush.msra.mxu1 %v89_v6 }
   0x6   :  { %56 = vmatpush.msra.mxu0 %v47_v2 }
   0x7   :  { %97 = vmatpush.msra.mxu1 %v88_v7 }
   0x8   :  { %57 = vmatpush.msra.mxu0 %v46_v3 }
   0xa   :  { %58 = vmatpush.msra.mxu0 %v45_v5 }
   0xc   :  { %59 = vmatpush.msra.mxu0 %v44_v8 }
   0xd   :  { %14 = vsyncpa [#allocation3], 0  ;;  %v42_v12 = vld [vmem:[%s432_s1 + $0x40] sm:$0xff]  ;;  %98 = vmatpush.msra.mxu1 %v87_v10  ;;  %v85_v13 = vld [vmem:[%s434_s3 + $0x50] sm:$0xff]  ;;  %s171_s28 = sshll.u32 %s440_s9, 4  ;;  %s172_s28 = int_to_ptr.hbm [resolvable:$true] %s171_s28 }
   0xe   :  { %60 = vmatpush.msra.mxu0 %v43_v9  ;;  %v41_v14 = vld [vmem:[%s432_s1 + $0x38] sm:$0xff]  ;;  %v84_v15 = vld [vmem:[%s434_s3 + $0x48] sm:$0xff]  ;;  %v40_v16 = vld [vmem:[%s432_s1 + $0x30] sm:$0xff] }
   0xf   :  { %99 = vmatpush.msra.mxu1 %v86_v11  ;;  %v83_v17 = vld [vmem:[%s434_s3 + $0x40] sm:$0xff]  ;;  %v39_v18 = vld [vmem:[%s432_s1 + $0x28] sm:$0xff]  ;;  %v82_v19 = vld [vmem:[%s434_s3 + $0x38] sm:$0xff] }
  0x10   :  { %61 = vmatpush.msra.mxu0 %v42_v12  ;;  %v38_v20 = vld [vmem:[%s432_s1 + $0x20] sm:$0xff]  ;;  %v81_v21 = vld [vmem:[%s434_s3 + $0x30] sm:$0xff]  ;;  %v37_v22 = vld [vmem:[%s432_s1 + $0x18] sm:$0xff] }
  0x11   :  { %100 = vmatpush.msra.mxu1 %v85_v13  ;;  %v80_v23 = vld [vmem:[%s434_s3 + $0x28] sm:$0xff]  ;;  %v36_v24 = vld [vmem:[%s432_s1 + $0x10] sm:$0xff]  ;;  %v34_v26 = vld [vmem:[%s432_s1] sm:$0xff] }
  0x12   :  { %62 = vmatpush.msra.mxu0 %v41_v14  ;;  %v35_v25 = vld [vmem:[%s432_s1 + $0x8] sm:$0xff]  ;;  %v33_v27 = vld [vmem:[%s431_s0] sm:$0xff]  ;;  %v78_v29 = vld [vmem:[%s434_s3 + $0x18] sm:$0xff] }
  0x13   :  { %101 = vmatpush.msra.mxu1 %v84_v15  ;;  %v79_v28 = vld [vmem:[%s434_s3 + $0x20] sm:$0xff]  ;;  %v77_v30 = vld [vmem:[%s434_s3 + $0x10] sm:$0xff]  ;;  %v76_v31 = vld [vmem:[%s434_s3 + $0x8] sm:$0xff] }
  0x14   :  { %63 = vmatpush.msra.mxu0 %v40_v16  ;;  %v75_v32 = vld [vmem:[%s434_s3] sm:$0xff]  ;;  %v131_v33 = vld [vmem:[%s436_s5 + $0x78] sm:$0xff]  ;;  %v130_v34 = vld [vmem:[%s436_s5 + $0x70] sm:$0xff] }
  0x15   :  { %102 = vmatpush.msra.mxu1 %v83_v17  ;;  %136 = vmatpush.msra.mxu2 %v131_v33  ;;  %v129_v35 = vld [vmem:[%s436_s5 + $0x68] sm:$0xff]  ;;  %v128_v36 = vld [vmem:[%s436_s5 + $0x60] sm:$0xff]  ;;  %v127_v37 = vld [vmem:[%s436_s5 + $0x58] sm:$0xff] }
  0x16   :  { %64 = vmatpush.msra.mxu0 %v39_v18  ;;  %v126_v38 = vld [vmem:[%s436_s5 + $0x50] sm:$0xff]  ;;  %v125_v39 = vld [vmem:[%s436_s5 + $0x48] sm:$0xff]  ;;  %v124_v40 = vld [vmem:[%s436_s5 + $0x40] sm:$0xff] }
  0x17   :  { %103 = vmatpush.msra.mxu1 %v82_v19  ;;  %137 = vmatpush.msra.mxu2 %v130_v34  ;;  %v123_v41 = vld [vmem:[%s436_s5 + $0x38] sm:$0xff]  ;;  %v122_v42 = vld [vmem:[%s436_s5 + $0x30] sm:$0xff]  ;;  %v121_v43 = vld [vmem:[%s436_s5 + $0x28] sm:$0xff] }
  0x18   :  { %65 = vmatpush.msra.mxu0 %v38_v20  ;;  %v181_v44 = vld [vmem:[%s433_s2] ss:$0 sm:$0xff]  ;;  %v119_v49 = vld [vmem:[%s436_s5 + $0x18] sm:$0xff]  ;;  %v118_v50 = vld [vmem:[%s436_s5 + $0x10] sm:$0xff] }
  0x19   :  { %104 = vmatpush.msra.mxu1 %v81_v21  ;;  %138 = vmatpush.msra.mxu2 %v129_v35  ;;  %v120_v48 = vld [vmem:[%s436_s5 + $0x20] sm:$0xff]  ;;  %v117_v51 = vld [vmem:[%s436_s5 + $0x8] sm:$0xff] }
  0x1a   :  { %66 = vmatpush.msra.mxu0 %v37_v22  ;;  %v116_v52 = vld [vmem:[%s436_s5] sm:$0xff] }
  0x1b   :  { %105 = vmatpush.msra.mxu1 %v80_v23  ;;  %139 = vmatpush.msra.mxu2 %v128_v36  ;;  %v182_v53 = vld [vmem:[%s435_s4] ss:$0 sm:$0xff]  ;;  %s215_s4 = smov [#allocation2]  }
  0x1c   :  { %67 = vmatpush.msra.mxu0 %v36_v24  ;;  %v184_v57 = vld [vmem:[%s438_s7] ss:$0 sm:$0xff]  ;;  %s169_s25 = sshll.u32 %s215_s4, 4  ;;  %s170_s25 = int_to_ptr.vmem [resolvable:$true] %s169_s25 }
  0x1d   :  { %106 = vmatpush.msra.mxu1 %v79_v28  ;;  %140 = vmatpush.msra.mxu2 %v127_v37  ;;  %v157_v58 = vld [vmem:[%s439_s8] sm:$0xff] }
  0x1e   :  { %68 = vmatpush.msra.mxu0 %v35_v25  ;;  %v183_v59 = vld [vmem:[%s437_s6] ss:$0 sm:$0xff]  ;;  %v161_v60 = vmul.f32 %v184_v57, %v157_v58 }
  0x1f   :  { %107 = vmatpush.msra.mxu1 %v78_v29  ;;  %141 = vmatpush.msra.mxu2 %v126_v38 }
  0x20   :  { %69 = vmatpush.msra.mxu0 %v34_v26 }
  0x21   :  { %70 = vmatmul.f32.vlgmr.msra.gmra.mxu0 %v33_v27  ;;  %108 = vmatpush.msra.mxu1 %v77_v30 }
  0x22   :  { %142 = vmatpush.msra.mxu2 %v125_v39 }
  0x23   :  { %109 = vmatpush.msra.mxu1 %v76_v31 }
  0x24   :  { %143 = vmatpush.msra.mxu2 %v124_v40 }
  0x25   :  { %110 = vmatpush.msra.mxu1 %v75_v32 }
  0x26   :  { %144 = vmatpush.msra.mxu2 %v123_v41 }
  0x28   :  { %145 = vmatpush.msra.mxu2 %v122_v42 }
  0x2a   :  { %146 = vmatpush.msra.mxu2 %v121_v43 }
  0x2c   :  { %147 = vmatpush.msra.mxu2 %v120_v48 }
  0x2e   :  { %148 = vmatpush.msra.mxu2 %v119_v49 }
  0x30   :  { %149 = vmatpush.msra.mxu2 %v118_v50 }
  0x32   :  { %150 = vmatpush.msra.mxu2 %v117_v51 }
  0x34   :  { %151 = vmatpush.msra.mxu2 %v116_v52 }
  0x9e   :  { %v71_v45 = vpop.f32.mrf.mxu0 }
  0x9f   :  { %v72_v46 = vadd.f32 %v181_v44, %v71_v45 }
  0xa1   :  { %185 = vtanh.f32 %v72_v46 }
  0xa7   :  { %v186_v47 = vpop.eup %185 }
  0xa8   :  { %111 = vmatmul.f32.vlgmr.msra.gmra.mxu1 %v186_v47 }
 0x125   :  { %v112_v54 = vpop.f32.mrf.mxu1 }
 0x126   :  { %v113_v55 = vadd.f32 %v182_v53, %v112_v54 }
 0x128   :  { %187 = vtanh.f32 %v113_v55 }
 0x12e   :  { %v188_v56 = vpop.eup %187 }
 0x12f   :  { %152 = vmatmul.f32.vlgmr.msra.gmra.mxu2 %v188_v56 }
 0x1b2   :  { %v153_v61 = vpop.f32.mrf.mxu2 }
 0x1b3   :  { %v154_v62 = vadd.f32 %v183_v59, %v153_v61 }
 0x1b5   :  { %v162_v63 = vadd.f32 %v161_v60, %v154_v62 }
 0x1b7   :  { %163 = vst [vmem:[#allocation2] sm:$0xff] %v162_v63 }
 0x1b8   :  { %174 = dma.vmem_to_hbm [thread:$0]  %s170_s25, 128, %s172_s28, [#allocation3]  }
 0x1b9   :  { %213 = dma.done.wait [#allocation3], 128  }
 0x1ba   :  { %214 = vsyncadd [#allocation3], 4294967168 }
 0x1bb   :  { %179 = vsyncpa [#allocation3], 1 }

</bundles_post_ra>
